<compile_context>
chip_gen: v5e
topology: v5e:2x2
jax: 0.10.0
libtpu: 0.0.40
codegen_flags: <defaults>
</compile_context>

<pallas_src>
import jax
import jax.numpy as jnp
from jax.experimental import pallas as pl
from jax.experimental.pallas import tpu as pltpu

LANE = 128     # lane width: last-dim quantum
SUBLANE = 8    # sublane quantum: second-to-last-dim quantum


def _round_up(x, m):
    return ((x + m - 1) // m) * m


def _pick_tile(total, target, quantum):
    """Largest multiple of `quantum` that divides `total` and is <= target."""
    t = min(_round_up(target, quantum), total)
    t -= t % quantum
    while t > quantum and total % t != 0:
        t -= quantum
    return max(t, quantum)


def expert_kernel(x_ref, w1_ref, b1_ref, w2_ref, b2_ref, scale_ref,
                  o_ref, acc_ref):
    h_step = pl.program_id(1)

    @pl.when(h_step == 0)
    def _init():
        acc_ref[...] = jnp.zeros_like(acc_ref)

    # ---- Linear 1 chunk (bf16 MXU, f32 accumulate) + bias + ReLU ----
    h = jnp.dot(x_ref[...], w1_ref[...], preferred_element_type=jnp.float32)
    h = jnp.maximum(h + b1_ref[...], 0.0)

    # ---- Linear 2: accumulate this hidden chunk's contribution ----
    acc_ref[...] += jnp.dot(h.astype(w2_ref.dtype), w2_ref[...],
                            preferred_element_type=jnp.float32)

    # ---- Epilogue on the last hidden chunk: bias + inverted dropout ----
    @pl.when(h_step == pl.num_programs(1) - 1)
    def _finalize():
        y = acc_ref[...] + b2_ref[...]
        o_ref[...] = (y * scale_ref[...]).astype(o_ref.dtype)


def expert_forward(x2d, w1, b1, w2, b2, keep_scale, *, tm=256, th=512,
                   vmem_cap_bytes=48 * 1024 * 1024):
    """x2d: (M, E) rows; weights stored (in, out); keep_scale: (M, E) f32."""
    M, E = x2d.shape
    H = w1.shape[1]

    # Lane-align feature dims (no-op when E, H are already multiples of 128).
    Ep = _round_up(E, LANE)
    Hp = _round_up(H, LANE)

    # Row tile: multiple of 8, capped by the problem size.
    tm = _round_up(min(tm, max(M, SUBLANE)), SUBLANE)
    th = _pick_tile(Hp, th, LANE)

    # Rough double-buffered working-set estimate; shrink tm until it fits a
    # conservative cap so the same config is safe on v7x (64 MiB physical).
    def vmem_bytes(tm_, th_):
        dbl = 2  # default double-buffering of pipelined blocks
        return (dbl * tm_ * Ep * 2          # x tile (bf16)
                + dbl * Ep * th_ * 2        # W1 chunk (bf16)
                + dbl * th_ * Ep * 2        # W2 chunk (bf16)
                + dbl * (th_ + Ep) * 4      # biases (f32)
                + dbl * tm_ * Ep * 4        # dropout scale tile (f32)
                + dbl * tm_ * Ep * 4        # output tile (f32)
                + tm_ * Ep * 4              # f32 accumulator scratch
                + tm_ * th_ * 4)            # h intermediate (f32)

    while tm > SUBLANE and vmem_bytes(tm, th) > vmem_cap_bytes:
        tm = max(SUBLANE, _round_up(tm // 2, SUBLANE))

    Mp = _round_up(M, tm)  # pad rows so no tail tile is silently dropped

    # Pad + cast operands (padding contributes exact zeros to the matmuls).
    x_p = jnp.pad(x2d, ((0, Mp - M), (0, Ep - E))).astype(jnp.bfloat16)
    w1_p = jnp.pad(w1, ((0, Ep - E), (0, Hp - H))).astype(jnp.bfloat16)
    b1_p = jnp.pad(b1, ((0, 0), (0, Hp - H))).astype(jnp.float32)
    w2_p = jnp.pad(w2, ((0, Hp - H), (0, Ep - E))).astype(jnp.bfloat16)
    b2_p = jnp.pad(b2, ((0, 0), (0, Ep - E))).astype(jnp.float32)
    sc_p = jnp.pad(keep_scale, ((0, Mp - M), (0, Ep - E))).astype(jnp.float32)

    grid = (Mp // tm, Hp // th)

    out_p = pl.pallas_call(
        expert_kernel,
        out_shape=jax.ShapeDtypeStruct((Mp, Ep), jnp.float32),
        grid=grid,
        in_specs=[
            pl.BlockSpec((tm, Ep), lambda i, h: (i, 0)),   # x row tile
            pl.BlockSpec((Ep, th), lambda i, h: (0, h)),   # W1 hidden chunk
            pl.BlockSpec((1, th), lambda i, h: (0, h)),    # b1 chunk
            pl.BlockSpec((th, Ep), lambda i, h: (h, 0)),   # W2 hidden chunk
            pl.BlockSpec((1, Ep), lambda i, h: (0, 0)),    # b2
            pl.BlockSpec((tm, Ep), lambda i, h: (i, 0)),   # dropout scale
        ],
        out_specs=pl.BlockSpec((tm, Ep), lambda i, h: (i, 0)),
        scratch_shapes=[pltpu.VMEM((tm, Ep), jnp.float32)],
        compiler_params=pltpu.CompilerParams(
            dimension_semantics=("parallel", "arbitrary"),
            vmem_limit_bytes=int(min(max(2 * vmem_bytes(tm, th), 32 << 20),
                                     48 << 20)),
        ),
    )(x_p, w1_p, b1_p, w2_p, b2_p, sc_p)

    return out_p[:M, :E].astype(x2d.dtype)


def dropout_scale(key, shape, p=0.5):
    """Inverted-dropout scale: 1/(1-p) where kept, 0 where dropped."""
    keep = jax.random.bernoulli(key, 1.0 - p, shape)
    return keep.astype(jnp.float32) / (1.0 - p)


def expert_apply(x, w1, b1, w2, b2, dropout_key, *, training=True):
    """x: (batch, seq, n_embd) -> (batch, seq, n_embd)"""
    B, T, E = x.shape
    x2d = x.reshape(B * T, E)
    if training:
        scale = dropout_scale(dropout_key, (B * T, E), p=0.5)
    else:
        scale = jnp.ones((B * T, E), jnp.float32)
    y2d = expert_forward(x2d, w1, b1, w2, b2, scale)
    return y2d.reshape(B, T, E)


if __name__ == "__main__":
    # Small shapes consistent with the module: batch=2, seq=8, n_embd=32.
    n_embd = 32
    hidden = 4 * n_embd
    B, T = 2, 8

    key = jax.random.PRNGKey(0)
    kx, k1, k2, k3, k4, kdrop = jax.random.split(key, 6)

    x = jax.random.normal(kx, (B, T, n_embd), dtype=jnp.float32)
    # Weights stored (in, out): kernel computes x @ W + b (== torch x @ W.T + b).
    w1 = jax.random.normal(k1, (n_embd, hidden), jnp.float32) / jnp.sqrt(n_embd)
    b1 = jax.random.normal(k2, (1, hidden), jnp.float32) * 0.01
    w2 = jax.random.normal(k3, (hidden, n_embd), jnp.float32) / jnp.sqrt(hidden)
    b2 = jax.random.normal(k4, (1, n_embd), jnp.float32) * 0.01

    y = expert_apply(x, w1, b1, w2, b2, kdrop)
    y = jax.block_until_ready(y)

    # Reference on the same bf16-matmul / f32-accumulate precision path.
    x2d = x.reshape(-1, n_embd)
    h_ref = jnp.maximum(
        jnp.dot(x2d.astype(jnp.bfloat16), w1.astype(jnp.bfloat16),
                preferred_element_type=jnp.float32) + b1, 0.0)
    y_ref = jnp.dot(h_ref.astype(jnp.bfloat16), w2.astype(jnp.bfloat16),
                    preferred_element_type=jnp.float32) + b2
    expected = (y_ref * dropout_scale(kdrop, (B * T, n_embd), p=0.5))
    expected = expected.reshape(B, T, n_embd)

    assert y.shape == x.shape and y.dtype == x.dtype
    assert bool(jnp.allclose(y, expected, rtol=2e-2, atol=2e-2)), \
        "Expert MLP + dropout mismatch vs reference"

    print("KERNEL_OK")
</pallas_src>

<mosaic_0001>
module attributes {stable_mosaic.version = 11 : i64} {
  func.func @expert_kernel(%arg0: i32, %arg1: i32, %arg2: memref<16x128xbf16, #tpu.memory_space<vmem>>, %arg3: memref<128x128xbf16, #tpu.memory_space<vmem>>, %arg4: memref<1x128xf32, #tpu.memory_space<vmem>>, %arg5: memref<128x128xbf16, #tpu.memory_space<vmem>>, %arg6: memref<1x128xf32, #tpu.memory_space<vmem>>, %arg7: memref<16x128xf32, #tpu.memory_space<vmem>>, %arg8: memref<16x128xf32, #tpu.memory_space<vmem>>, %arg9: memref<16x128xf32, #tpu.memory_space<vmem>>) attributes {dimension_semantics = [#tpu.dimension_semantics<parallel>, #tpu.dimension_semantics<arbitrary>], iteration_bounds = array<i64: 1, 1>, scalar_prefetch = 0 : i64, scratch_operands = 1 : i64, tpu.core_type = #tpu.core_type<tc>, window_params = [{transform_indices = @transform_0, window_bounds = array<i64: 16, 128>}, {transform_indices = @transform_1, window_bounds = array<i64: 128, 128>}, {transform_indices = @transform_2, window_bounds = array<i64: 1, 128>}, {transform_indices = @transform_3, window_bounds = array<i64: 128, 128>}, {pipeline_mode = #tpu.pipeline_mode<synchronous>, transform_indices = @transform_4, window_bounds = array<i64: 1, 128>}, {transform_indices = @transform_5, window_bounds = array<i64: 16, 128>}, {transform_indices = @transform_6, window_bounds = array<i64: 16, 128>}]} {
    %c0_i32 = arith.constant 0 : i32
    %0 = arith.cmpi eq, %arg1, %c0_i32 : i32
    %1 = arith.extui %0 : i1 to i32
    %c0_i32_0 = arith.constant 0 : i32
    %2 = arith.cmpi ne, %1, %c0_i32_0 : i32
    scf.if %2 {
      %cst_16 = arith.constant 0.000000e+00 : f32
      %20 = vector.broadcast %cst_16 : f32 to vector<16x128xf32>
      %c0_17 = arith.constant 0 : index
      %c0_18 = arith.constant 0 : index
      %21 = vector.load %arg9[%c0_17, %c0_18] : memref<16x128xf32, #tpu.memory_space<vmem>>, vector<16x128xf32>
      tpu.vector_store %arg9[%c0_17, %c0_18], %20 {strides = array<i32>} : memref<16x128xf32, #tpu.memory_space<vmem>>, vector<16x128xf32>,
    } else {
    }
    %c0 = arith.constant 0 : index
    %c0_1 = arith.constant 0 : index
    %3 = vector.load %arg2[%c0, %c0_1] : memref<16x128xbf16, #tpu.memory_space<vmem>>, vector<16x128xbf16>
    %c0_2 = arith.constant 0 : index
    %c0_3 = arith.constant 0 : index
    %4 = vector.load %arg3[%c0_2, %c0_3] : memref<128x128xbf16, #tpu.memory_space<vmem>>, vector<128x128xbf16>
    %cst = arith.constant dense<0.000000e+00> : vector<16x128xf32>
    %5 = tpu.matmul %3, %4, %cst {dimension_numbers = #tpu.dot_dimension_numbers<[1], [0], [0], [1], [0, 0, 1, 1], [], []>} : vector<16x128xbf16>, vector<128x128xbf16>, vector<16x128xf32> -> vector<16x128xf32>
    %c0_4 = arith.constant 0 : index
    %c0_5 = arith.constant 0 : index
    %6 = vector.load %arg4[%c0_4, %c0_5] : memref<1x128xf32, #tpu.memory_space<vmem>>, vector<1x128xf32>
    %7 = vector.broadcast %6 : vector<1x128xf32> to vector<16x128xf32>
    %8 = arith.addf %5, %7 : vector<16x128xf32>
    %cst_6 = arith.constant 0.000000e+00 : f32
    %9 = vector.broadcast %cst_6 : f32 to vector<16x128xf32>
    %10 = arith.maximumf %8, %9 : vector<16x128xf32>
    %c0_7 = arith.constant 0 : index
    %c0_8 = arith.constant 0 : index
    %11 = vector.load %arg9[%c0_7, %c0_8] : memref<16x128xf32, #tpu.memory_space<vmem>>, vector<16x128xf32>
    %12 = arith.truncf %10 : vector<16x128xf32> to vector<16x128xbf16>
    %c0_9 = arith.constant 0 : index
    %c0_10 = arith.constant 0 : index
    %13 = vector.load %arg5[%c0_9, %c0_10] : memref<128x128xbf16, #tpu.memory_space<vmem>>, vector<128x128xbf16>
    %cst_11 = arith.constant dense<0.000000e+00> : vector<16x128xf32>
    %14 = tpu.matmul %12, %13, %cst_11 {dimension_numbers = #tpu.dot_dimension_numbers<[1], [0], [0], [1], [0, 0, 1, 1], [], []>} : vector<16x128xbf16>, vector<128x128xbf16>, vector<16x128xf32> -> vector<16x128xf32>
    %15 = arith.addf %11, %14 : vector<16x128xf32>
    %c0_12 = arith.constant 0 : index
    %c0_13 = arith.constant 0 : index
    %16 = vector.load %arg9[%c0_12, %c0_13] : memref<16x128xf32, #tpu.memory_space<vmem>>, vector<16x128xf32>
    tpu.vector_store %arg9[%c0_12, %c0_13], %15 {strides = array<i32>} : memref<16x128xf32, #tpu.memory_space<vmem>>, vector<16x128xf32>,
    %c0_i32_14 = arith.constant 0 : i32
    %17 = arith.cmpi eq, %arg1, %c0_i32_14 : i32
    %18 = arith.extui %17 : i1 to i32
    %c0_i32_15 = arith.constant 0 : i32
    %19 = arith.cmpi ne, %18, %c0_i32_15 : i32
    scf.if %19 {
      %c0_16 = arith.constant 0 : index
      %c0_17 = arith.constant 0 : index
      %20 = vector.load %arg9[%c0_16, %c0_17] : memref<16x128xf32, #tpu.memory_space<vmem>>, vector<16x128xf32>
      %c0_18 = arith.constant 0 : index
      %c0_19 = arith.constant 0 : index
      %21 = vector.load %arg6[%c0_18, %c0_19] : memref<1x128xf32, #tpu.memory_space<vmem>>, vector<1x128xf32>
      %22 = vector.broadcast %21 : vector<1x128xf32> to vector<16x128xf32>
      %23 = arith.addf %20, %22 : vector<16x128xf32>
      %c0_20 = arith.constant 0 : index
      %c0_21 = arith.constant 0 : index
      %24 = vector.load %arg7[%c0_20, %c0_21] : memref<16x128xf32, #tpu.memory_space<vmem>>, vector<16x128xf32>
      %25 = arith.mulf %23, %24 : vector<16x128xf32>
      %c0_22 = arith.constant 0 : index
      %c0_23 = arith.constant 0 : index
      %26 = vector.load %arg8[%c0_22, %c0_23] : memref<16x128xf32, #tpu.memory_space<vmem>>, vector<16x128xf32>
      tpu.vector_store %arg8[%c0_22, %c0_23], %25 {strides = array<i32>} : memref<16x128xf32, #tpu.memory_space<vmem>>, vector<16x128xf32>,
    } else {
    }
    return
  }
  func.func @transform_0(%arg0: i32, %arg1: i32) -> (i32, i32) {
    %c0_i32 = arith.constant 0 : i32
    %c0_i32_0 = arith.constant 0 : i32
    return %arg0, %c0_i32 : i32, i32
  }
  func.func @transform_1(%arg0: i32, %arg1: i32) -> (i32, i32) {
    %c0_i32 = arith.constant 0 : i32
    %c0_i32_0 = arith.constant 0 : i32
    return %c0_i32, %arg1 : i32, i32
  }
  func.func @transform_2(%arg0: i32, %arg1: i32) -> (i32, i32) {
    %c0_i32 = arith.constant 0 : i32
    %c0_i32_0 = arith.constant 0 : i32
    return %c0_i32, %arg1 : i32, i32
  }
  func.func @transform_3(%arg0: i32, %arg1: i32) -> (i32, i32) {
    %c0_i32 = arith.constant 0 : i32
    %c0_i32_0 = arith.constant 0 : i32
    return %arg1, %c0_i32 : i32, i32
  }
  func.func @transform_4(%arg0: i32, %arg1: i32) -> (i32, i32) {
    %c0_i32 = arith.constant 0 : i32
    %c0_i32_0 = arith.constant 0 : i32
    %c0_i32_1 = arith.constant 0 : i32
    return %c0_i32, %c0_i32_0 : i32, i32
  }
  func.func @transform_5(%arg0: i32, %arg1: i32) -> (i32, i32) {
    %c0_i32 = arith.constant 0 : i32
    %c0_i32_0 = arith.constant 0 : i32
    return %arg0, %c0_i32 : i32, i32
  }
  func.func @transform_6(%arg0: i32, %arg1: i32) -> (i32, i32) {
    %c0_i32 = arith.constant 0 : i32
    %c0_i32_0 = arith.constant 0 : i32
    return %arg0, %c0_i32 : i32, i32
  }
}

</mosaic_0001>

<bundles_post_ra>
// kernel: tpu_custom_call.1
= control target key start
LH: loop header
LB: loop body
LE: loop exit
PB: predicated region body
PF: predicated region fallthrough
CT: control target
= control target key end

     0   :  { %11 = vsyncpa [#allocation4], 0  ;;  %s603_s0 = inlined_call_operand.hbm [shape: bf16[16,128], index: 0, kind: input, shape index: {}]   ;;  %s604_s1 = inlined_call_operand.hbm [shape: bf16[128,128], index: 1, kind: input, shape index: {}]   ;;  %s605_s2 = inlined_call_operand.vmem [shape: f32[1,128], index: 2, kind: input, shape index: {}]   ;;  %s606_s3 = inlined_call_operand.hbm [shape: bf16[128,128], index: 3, kind: input, shape index: {}]   ;;  %s607_s4 = inlined_call_operand.vmem [shape: f32[1,128], index: 4, kind: input, shape index: {}]   ;;  %s608_s5 = inlined_call_operand.hbm [shape: f32[16,128], index: 5, kind: input, shape index: {}]   ;;  %s609_s6 = inlined_call_operand.hbm [shape: f32[16,128], index: 6, kind: output, shape index: {}]  }
   0x1   :  { %12 = vsyncpa [#allocation7], 0 }
   0x2   :  { %13 = vsyncpa [#allocation10], 0 }
   0x3   :  { %14 = vsyncpa [#allocation5], 0  ;;  %s32_s23 = sshll.u32 %s604_s1, 4  ;;  %s532_s24 = smov [#allocation6]   ;;  %s33_s23 = int_to_ptr.hbm [resolvable:$true] %s32_s23 }
   0x4   :  { %s34_s25 = sshll.u32 %s532_s24, 4  ;;  %s19_s28 = sshll.u32 %s603_s0, 4  ;;  %s35_s25 = int_to_ptr.vmem [resolvable:$true] %s34_s25  ;;  %s20_s28 = int_to_ptr.hbm [resolvable:$true] %s19_s28 }
   0x5   :  { %s533_s29 = smov 64   ;;  %s534_s30 = smov 4  }
   0x6   :  { %40 = dma.hbm_to_vmem [thread:$0]  %s33_s23, 1024, %s35_s25, [#allocation7], %s533_s29, %s533_s29, %s534_s30  }
   0x7   :  { %s535_s7 = smov [#allocation3]   ;;  %s47_s11 = sshll.u32 %s606_s3, 4  ;;  %s48_s11 = int_to_ptr.hbm [resolvable:$true] %s47_s11 }
   0x8   :  { %s21_s8 = sshll.u32 %s535_s7, 4  ;;  %s62_s13 = sshll.u32 %s608_s5, 4  ;;  %s22_s8 = int_to_ptr.vmem [resolvable:$true] %s21_s8  ;;  %s63_s13 = int_to_ptr.hbm [resolvable:$true] %s62_s13 }
   0x9   :  { %27 = dma.hbm_to_vmem [thread:$0]  %s20_s28, 128, %s22_s8, [#allocation4], %s533_s29, %s533_s29, %s534_s30  }
   0xa   :  { %s536_s14 = smov [#allocation8]   ;;  %s537_s0 = smov [#allocation9]  }
   0xb   :  { %s49_s15 = sshll.u32 %s536_s14, 4  ;;  %s64_s16 = sshll.u32 %s537_s0, 4  ;;  %s50_s15 = int_to_ptr.vmem [resolvable:$true] %s49_s15  ;;  %s65_s16 = int_to_ptr.vmem [resolvable:$true] %s64_s16 }
   0xc   :  { %55 = dma.hbm_to_vmem [thread:$0]  %s48_s11, 1024, %s50_s15, [#allocation7], %s533_s29, %s533_s29, %s534_s30  }
   0xd   :  { %s538_s17 = smov 128   ;;  %s539_s18 = smov 8  }
   0xe   :  { %70 = dma.hbm_to_vmem [thread:$0]  %s63_s13, 256, %s65_s16, [#allocation10], %s538_s17, %s538_s17, %s539_s18  }
   0xf   :  { %524 = dma.done.wait [#allocation4], 128  }
  0x10   :  { %525 = vsyncadd [#allocation4], 4294967168 }
  0x11   :  { %526 = dma.done.wait [#allocation7], 2048  }
  0x12   :  { %527 = vsyncadd [#allocation7], 4294965248 }
  0x13   :  { %528 = dma.done.wait [#allocation10], 256  }
  0x14   :  { %529 = vsyncadd [#allocation10], 4294967040  ;;  %v384_v0 = vld [vmem:[#allocation6 + $0x38] sm:$0xff]  ;;  %v383_v1 = vld [vmem:[#allocation6 + $0x30] sm:$0xff]  ;;  %s540_s21 = smov [#allocation11]   ;;  %s293_s24 = sshll.u32 %s609_s6, 4  ;;  %s294_s24 = int_to_ptr.hbm [resolvable:$true] %s293_s24 }
  0x15   :  { %169 = vmatpush.bf16.msra.mxu0 %v384_v0  ;;  %v392_v2 = vld [vmem:[#allocation8 + $0x38] sm:$0xff]  ;;  %v391_v3 = vld [vmem:[#allocation8 + $0x30] sm:$0xff]  ;;  %v382_v4 = vld [vmem:[#allocation6 + $0x28] sm:$0xff] }
  0x16   :  { %252 = vmatpush.bf16.msra.mxu1 %v392_v2  ;;  %v390_v5 = vld [vmem:[#allocation8 + $0x28] sm:$0xff]  ;;  %v381_v6 = vld [vmem:[#allocation6 + $0x20] sm:$0xff]  ;;  %v380_v8 = vld [vmem:[#allocation6 + $0x18] sm:$0xff] }
  0x17   :  { %v389_v7 = vld [vmem:[#allocation8 + $0x20] sm:$0xff]  ;;  %v379_v9 = vld [vmem:[#allocation6 + $0x10] sm:$0xff]  ;;  %v378_v10 = vld [vmem:[#allocation6 + $0x8] sm:$0xff] }
  0x18   :  { %v377_v11 = vld [vmem:[#allocation6] sm:$0xff]  ;;  %v376_v12 = vld [vmem:[#allocation3] sm:$0xff]  ;;  %v387_v14 = vld [vmem:[#allocation8 + $0x10] sm:$0xff] }
  0x19   :  { %170 = vmatpush.bf16.msra.mxu0 %v383_v1  ;;  %v388_v13 = vld [vmem:[#allocation8 + $0x18] sm:$0xff]  ;;  %v386_v15 = vld [vmem:[#allocation8 + $0x8] sm:$0xff]  ;;  %v385_v16 = vld [vmem:[#allocation8] sm:$0xff] }
  0x1a   :  { %253 = vmatpush.bf16.msra.mxu1 %v391_v3  ;;  %v402_v18 = vld [vmem:[%s605_s2] ss:$0 sm:$0xff]  ;;  %v281_v27 = vld [vmem:[#allocation9] sm:$0xff]  ;;  %v282_v31 = vld [vmem:[#allocation9 + $0x8] sm:$0xff]  ;;  %s291_s2 = sshll.u32 %s540_s21, 4  ;;  %s292_s2 = int_to_ptr.vmem [resolvable:$true] %s291_s2 }
  0x1b   :  { %v403_v25 = vld [vmem:[%s607_s4] ss:$0 sm:$0xff] }
  0x1d   :  { %171 = vmatpush.bf16.msra.mxu0 %v382_v4 }
  0x1e   :  { %254 = vmatpush.bf16.msra.mxu1 %v390_v5 }
  0x21   :  { %172 = vmatpush.bf16.msra.mxu0 %v381_v6 }
  0x22   :  { %255 = vmatpush.bf16.msra.mxu1 %v389_v7 }
  0x25   :  { %173 = vmatpush.bf16.msra.mxu0 %v380_v8 }
  0x26   :  { %256 = vmatpush.bf16.msra.mxu1 %v388_v13 }
  0x29   :  { %174 = vmatpush.bf16.msra.mxu0 %v379_v9 }
  0x2a   :  { %257 = vmatpush.bf16.msra.mxu1 %v387_v14 }
  0x2d   :  { %175 = vmatpush.bf16.msra.mxu0 %v378_v10 }
  0x2e   :  { %258 = vmatpush.bf16.msra.mxu1 %v386_v15 }
  0x31   :  { %176 = vmatpush.bf16.msra.mxu0 %v377_v11 }
  0x32   :  { %259 = vmatpush.bf16.msra.mxu1 %v385_v16 }
  0x34   :  { %177 = vmatmul.bf16.vlgmr.msra.gmra.mxu0 %v376_v12 }
  0xb1   :  { %v178_v17 = vpop.f32.mrf.mxu0 }
  0xb2   :  { %v179_v19 = vadd.f32 %v402_v18, %v178_v17 }
  0xb4   :  { %v183_v22 = vmax.f32 %v179_v19, 0.0 }
  0xb9   :  { %v180_v20 = vpop.f32.mrf.mxu0 }
  0xba   :  { %v181_v21 = vadd.f32 %v402_v18, %v180_v20 }
  0xbc   :  { %v184_v23 = vmax.f32 %v181_v21, 0.0 }
  0xbe   :  { %v187_v24 = vpack.c.bf16 %v184_v23, %v183_v22 }
  0xc0   :  { %260 = vmatmul.bf16.vlgmr.msra.gmra.mxu1 %v187_v24 }
 0x13d   :  { %v261_v26 = vpop.f32.mrf.mxu1 }
 0x13e   :  { %v279_v28 = vadd.f32 %v403_v25, %v261_v26 }
 0x140   :  { %v283_v29 = vmul.f32 %v281_v27, %v279_v28 }
 0x142   :  { %285 = vst [vmem:[#allocation11] sm:$0xff] %v283_v29 }
 0x145   :  { %v263_v30 = vpop.f32.mrf.mxu1 }
 0x146   :  { %v280_v32 = vadd.f32 %v403_v25, %v263_v30 }
 0x148   :  { %v284_v33 = vmul.f32 %v282_v31, %v280_v32 }
 0x14a   :  { %286 = vst [vmem:[#allocation11 + $0x8] sm:$0xff] %v284_v33 }
 0x14b   :  { %299 = dma.vmem_to_hbm [thread:$0]  %s292_s2, 256, %s294_s24, [#allocation5], %s538_s17, %s538_s17, %s539_s18  }
 0x14c   :  { %530 = dma.done.wait [#allocation5], 256  }
 0x14d   :  { %531 = vsyncadd [#allocation5], 4294967040 }
 0x14e   :  { %304 = vsyncpa [#allocation4], 1 }
 0x14f   :  { %305 = vsyncpa [#allocation7], 1 }
 0x150   :  { %306 = vsyncpa [#allocation10], 1 }
 0x151   :  { %307 = vsyncpa [#allocation5], 1 }

</bundles_post_ra>
